<compile_context>
chip_gen: v6e
topology: v6e:2x2x1
jax: 0.10.0
libtpu: 0.0.40
codegen_flags: <defaults>
</compile_context>

<pallas_src>
import jax
import jax.numpy as jnp
from jax.experimental import pallas as pl
from jax.experimental.pallas import tpu as pltpu


# ---------------------------------------------------------------------------
# Kernel 1: adaLN modulation  (SiLU + two small matmuls; "+1" folded in)
# ---------------------------------------------------------------------------
def modulation_kernel(vec_ref, ws_ref, wsh_ref, bs_ref, bsh_ref,
                      scale_ref, shift_ref):
    # vec_ref: (B, H); ws_ref/wsh_ref: (H, TN); bs_ref/bsh_ref: (1, TN)
    # scale_ref/shift_ref: (B, TN)   (scale_ref holds 1 + scale)
    v = vec_ref[...].astype(jnp.float32)            # elementwise math in f32 (v5e-safe)
    act = (v * jax.nn.sigmoid(v)).astype(ws_ref.dtype)   # SiLU, MXU operand dtype
    scale = jnp.dot(act, ws_ref[...], preferred_element_type=jnp.float32)
    shift = jnp.dot(act, wsh_ref[...], preferred_element_type=jnp.float32)
    scale_ref[...] = (scale + bs_ref[...].astype(jnp.float32)
                      + 1.0).astype(scale_ref.dtype)
    shift_ref[...] = (shift + bsh_ref[...].astype(jnp.float32)).astype(shift_ref.dtype)


# ---------------------------------------------------------------------------
# Kernel 2: LayerNorm + adaLN apply + final linear, tiled over batch*seq
# ---------------------------------------------------------------------------
def final_layer_kernel(img_ref, scale_ref, shift_ref, wl_ref, bl_ref, out_ref):
    # img_ref:   (1, TS, H)
    # scale_ref: (1, 1, H)   (already 1 + scale)   shift_ref: (1, 1, H)
    # wl_ref:    (H, O_pad)  bl_ref: (1, O_pad)
    # out_ref:   (1, TS, O)  (true, un-padded output width)
    x = img_ref[0].astype(jnp.float32)                     # (TS, H), LN stats in f32
    mean = jnp.mean(x, axis=-1, keepdims=True)
    mean_sq = jnp.mean(x * x, axis=-1, keepdims=True)
    var = mean_sq - mean * mean                            # one-pass variance
    inv = jax.lax.rsqrt(var + 1e-6)                        # (TS, 1)

    scale = scale_ref[0].astype(jnp.float32)               # (1, H), 1 + scale
    shift = shift_ref[0].astype(jnp.float32)
    modulated = (x - mean) * (inv * scale) + shift         # (TS, H)

    # Final projection: operands in weight dtype (bf16-native MXU), f32 acc.
    y = jnp.dot(modulated.astype(wl_ref.dtype), wl_ref[...],
                preferred_element_type=jnp.float32)        # (TS, O_pad)
    y = y + bl_ref[...].astype(jnp.float32)

    o = out_ref.shape[-1]                                  # true O; drop MXU pad
    out_ref[0] = y[:, :o].astype(out_ref.dtype)


# ---------------------------------------------------------------------------
# One-time parameter preparation (do NOT call per forward).
# ---------------------------------------------------------------------------
def prepare_final_layer_params(w_mod, b_mod, w_lin, b_lin,
                               *, compute_dtype=jnp.bfloat16):
    """w_mod: (2H, H) torch [out, in]; b_mod: (2H,); w_lin: (O, H); b_lin: (O,).

    Transposes to [in, out], splits modulation into scale/shift halves
    (scale = first half, per chunk(2, -1)), casts matmul weights to
    `compute_dtype` (bf16 by default; halves the HBM stream of the
    bandwidth-bound modulation kernel and the VMEM residency of W_lin), and
    pads the final projection to a 128-multiple column count for the MXU.
    Biases stay f32 (added after the f32 accumulation).
    """
    H = w_mod.shape[1]
    O = int(w_lin.shape[0])
    O_pad = ((O + 127) // 128) * 128

    wm_t = jnp.transpose(w_mod).astype(compute_dtype)      # (H, 2H): [scale | shift]
    w_scale = wm_t[:, :H]                                  # (H, H)
    w_shift = wm_t[:, H:]                                  # (H, H)
    b_scale = b_mod[:H].reshape(1, H).astype(jnp.float32)
    b_shift = b_mod[H:].reshape(1, H).astype(jnp.float32)

    wl = jnp.transpose(w_lin).astype(compute_dtype)        # (H, O)
    bl = b_lin.reshape(1, O).astype(jnp.float32)
    if O_pad != O:
        wl = jnp.pad(wl, ((0, 0), (0, O_pad - O)))
        bl = jnp.pad(bl, ((0, 0), (0, O_pad - O)))

    return dict(w_scale=w_scale, w_shift=w_shift,
                b_scale=b_scale, b_shift=b_shift,
                wl=wl, bl=bl, out_dim=O)


# ---------------------------------------------------------------------------
# Per-generation VMEM / tile budgeting
# ---------------------------------------------------------------------------
def _default_vmem_limit_bytes():
    try:
        cap = int(pltpu.get_tpu_info().vmem_capacity_bytes)
    except Exception:
        cap = 64 * 1024 * 1024                 # conservative (v7x-sized) fallback
    if cap >= 128 * 1024 * 1024:
        return 96 * 1024 * 1024                # v5e / v6e: 128 MiB physical VMEM
    return 44 * 1024 * 1024                    # v7x: 64 MiB/TC, leave scratch headroom


def _pick_seq_tile(S, H, O, img_itemsize, out_itemsize, vmem_limit, weight_bytes):
    """Largest seq tile s.t. double-buffered img/out blocks + weights + ~3 live
    f32 (ts, H) temporaries (LN/modulation intermediates) fit the VMEM budget."""
    if S <= 512:
        return S
    headroom = 4 * 1024 * 1024
    budget = max(vmem_limit - weight_bytes - headroom, 1 << 20)
    per_row = 2 * H * img_itemsize + 2 * O * out_itemsize + 3 * H * 4
    ts = int(min(budget // per_row, 2048, S))
    if ts >= S:
        return S
    return max((ts // 8) * 8, 8)               # tiled blocks must be 8-aligned


# ---------------------------------------------------------------------------
# Forward wrapper
# ---------------------------------------------------------------------------
def final_layer(img, vec, params, *, seq_tile=None, mod_col_tile=1024,
                vmem_limit_bytes=None):
    """img: (B, S, H) (f32 or bf16); vec: (B, H); params from
    prepare_final_layer_params. Output dtype follows img.dtype."""
    B, S, H = img.shape
    O = int(params["out_dim"])
    O_pad = params["wl"].shape[1]
    w_itemsize = jnp.dtype(params["wl"].dtype).itemsize

    if vmem_limit_bytes is None:
        vmem_limit_bytes = _default_vmem_limit_bytes()

    # ---- adaLN modulation: tiny kernel, column-tiled over H ----
    tn = H if H <= mod_col_tile else mod_col_tile
    assert tn == H or tn % 128 == 0, "mod_col_tile must be a multiple of 128 when tiling H"
    n_col = pl.cdiv(H, tn)
    scale, shift = pl.pallas_call(
        modulation_kernel,
        out_shape=(jax.ShapeDtypeStruct((B, H), jnp.float32),
                   jax.ShapeDtypeStruct((B, H), jnp.float32)),
        grid_spec=pltpu.PrefetchScalarGridSpec(
            num_scalar_prefetch=0,
            grid=(n_col,),
            in_specs=[
                pl.BlockSpec((B, H), lambda j: (0, 0)),       # vec (grid-invariant)
                pl.BlockSpec((H, tn), lambda j: (0, j)),      # w_scale cols
                pl.BlockSpec((H, tn), lambda j: (0, j)),      # w_shift cols
                pl.BlockSpec((1, tn), lambda j: (0, j)),      # b_scale
                pl.BlockSpec((1, tn), lambda j: (0, j)),      # b_shift
            ],
            out_specs=(pl.BlockSpec((B, tn), lambda j: (0, j)),
                       pl.BlockSpec((B, tn), lambda j: (0, j))),
        ),
        compiler_params=pltpu.CompilerParams(
            dimension_semantics=("parallel",),
            vmem_limit_bytes=vmem_limit_bytes),
    )(vec, params["w_scale"], params["w_shift"],
      params["b_scale"], params["b_shift"])

    scale3 = scale.reshape(B, 1, H)                # already 1 + scale
    shift3 = shift.reshape(B, 1, H)

    # ---- main kernel: flattened (batch * seq-tile) parallel grid ----
    weight_bytes = 2 * (H * O_pad + O_pad) * w_itemsize     # double-buffered wl/bl
    if seq_tile is None:
        ts = _pick_seq_tile(S, H, O,
                            jnp.dtype(img.dtype).itemsize,
                            jnp.dtype(img.dtype).itemsize,
                            vmem_limit_bytes, weight_bytes)
    else:
        ts = min(int(seq_tile), S)
    if ts < S:
        assert ts % 8 == 0, "seq_tile must be a multiple of 8 when it tiles S"
    n_s = pl.cdiv(S, ts)
    # NOTE: pipeline_mode=pl.Buffered(1) on the grid-invariant wl/bl/scale/shift
    # specs would free one weight buffer on newer JAX; skipped here for
    # portability (bf16 weights already halve that residency).

    out = pl.pallas_call(
        final_layer_kernel,
        out_shape=jax.ShapeDtypeStruct((B, S, O), img.dtype),
        grid_spec=pltpu.PrefetchScalarGridSpec(
            num_scalar_prefetch=0,
            grid=(B * n_s,),
            in_specs=[
                pl.BlockSpec((1, ts, H), lambda i: (i // n_s, i % n_s, 0)),  # img tile
                pl.BlockSpec((1, 1, H), lambda i: (i // n_s, 0, 0)),         # 1+scale
                pl.BlockSpec((1, 1, H), lambda i: (i // n_s, 0, 0)),         # shift
                pl.BlockSpec((H, O_pad), lambda i: (0, 0)),                  # w_lin^T (MXU-padded)
                pl.BlockSpec((1, O_pad), lambda i: (0, 0)),                  # b_lin   (padded)
            ],
            out_specs=pl.BlockSpec((1, ts, O), lambda i: (i // n_s, i % n_s, 0)),
        ),
        compiler_params=pltpu.CompilerParams(
            dimension_semantics=("parallel",),      # single flat axis -> both TCs busy
            vmem_limit_bytes=vmem_limit_bytes),
    )(img, scale3, shift3, params["wl"], params["bl"])
    return out


# ---------------------------------------------------------------------------
# Pure-JAX reference mirroring the PyTorch forward.
# ---------------------------------------------------------------------------
def final_layer_ref(img, vec, w_mod, b_mod, w_lin, b_lin):
    H = img.shape[-1]
    act = vec * jax.nn.sigmoid(vec)
    mod = act @ w_mod.T + b_mod                          # (B, 2H)
    scale, shift = mod[:, :H], mod[:, H:]                # chunk(2, -1): scale first
    mean = jnp.mean(img, axis=-1, keepdims=True)
    var = jnp.mean(jnp.square(img - mean), axis=-1, keepdims=True)
    normed = (img - mean) * jax.lax.rsqrt(var + 1e-6)
    x = normed * (1.0 + scale[:, None, :]) + shift[:, None, :]
    return x @ w_lin.T + b_lin


if __name__ == "__main__":
    # Small shapes consistent with the module.
    B, S = 2, 8
    hidden_size = 32
    patch_size = 2
    out_channels = 4
    O = patch_size ** 3 * out_channels                   # 32

    key = jax.random.PRNGKey(0)
    k_img, k_vec, k_wm, k_bm, k_wl, k_bl, k_img2, k_vec2 = jax.random.split(key, 8)

    img = jax.random.normal(k_img, (B, S, hidden_size), dtype=jnp.float32)
    vec = jax.random.normal(k_vec, (B, hidden_size), dtype=jnp.float32)

    # Deterministic synthetic parameters (torch-style [out, in] weight layout).
    w_mod = jax.random.normal(k_wm, (2 * hidden_size, hidden_size), jnp.float32) * 0.05
    b_mod = jax.random.normal(k_bm, (2 * hidden_size,), jnp.float32) * 0.05
    w_lin = jax.random.normal(k_wl, (O, hidden_size), jnp.float32) * 0.05
    b_lin = jax.random.normal(k_bl, (O,), jnp.float32) * 0.05

    ref = final_layer_ref(img, vec, w_mod, b_mod, w_lin, b_lin)

    # f32-weight path: tight tolerance vs reference.
    params_f32 = prepare_final_layer_params(w_mod, b_mod, w_lin, b_lin,
                                            compute_dtype=jnp.float32)
    out_f32 = jax.block_until_ready(final_layer(img, vec, params_f32))
    assert out_f32.shape == (B, S, O)
    assert jnp.allclose(out_f32, ref, atol=1e-4, rtol=1e-4), "f32 kernel mismatch vs reference"

    # bf16-weight path (production default): loosened tolerance for bf16 rounding.
    params_bf16 = prepare_final_layer_params(w_mod, b_mod, w_lin, b_lin)
    out_bf16 = jax.block_until_ready(final_layer(img, vec, params_bf16))
    assert out_bf16.shape == (B, S, O)
    assert jnp.allclose(out_bf16, ref, atol=5e-2, rtol=5e-2), "bf16 kernel mismatch vs reference"

    # Ragged seq-tiling path (ts < S, masked stores on the last tile).
    S2 = 24
    img2 = jax.random.normal(k_img2, (B, S2, hidden_size), dtype=jnp.float32)
    vec2 = jax.random.normal(k_vec2, (B, hidden_size), dtype=jnp.float32)
    ref2 = final_layer_ref(img2, vec2, w_mod, b_mod, w_lin, b_lin)
    out2 = jax.block_until_ready(final_layer(img2, vec2, params_f32, seq_tile=16))
    assert out2.shape == (B, S2, O)
    assert jnp.allclose(out2, ref2, atol=1e-4, rtol=1e-4), "tiled kernel mismatch vs reference"

    print("KERNEL_OK")
</pallas_src>

<mosaic_0001>
module attributes {stable_mosaic.version = 11 : i64} {
  func.func @modulation_kernel(%arg0: i32, %arg1: memref<2x32xf32, #tpu.memory_space<vmem>>, %arg2: memref<32x32xf32, #tpu.memory_space<vmem>>, %arg3: memref<32x32xf32, #tpu.memory_space<vmem>>, %arg4: memref<1x32xf32, #tpu.memory_space<vmem>>, %arg5: memref<1x32xf32, #tpu.memory_space<vmem>>, %arg6: memref<2x32xf32, #tpu.memory_space<vmem>>, %arg7: memref<2x32xf32, #tpu.memory_space<vmem>>) attributes {dimension_semantics = [#tpu.dimension_semantics<parallel>], iteration_bounds = array<i64: 1>, scalar_prefetch = 0 : i64, scratch_operands = 0 : i64, tpu.core_type = #tpu.core_type<tc>, window_params = [{pipeline_mode = #tpu.pipeline_mode<synchronous>, transform_indices = @transform_0, window_bounds = array<i64: 2, 32>}, {transform_indices = @transform_1, window_bounds = array<i64: 32, 32>}, {transform_indices = @transform_2, window_bounds = array<i64: 32, 32>}, {transform_indices = @transform_3, window_bounds = array<i64: 1, 32>}, {transform_indices = @transform_4, window_bounds = array<i64: 1, 32>}, {transform_indices = @transform_5, window_bounds = array<i64: 2, 32>}, {transform_indices = @transform_6, window_bounds = array<i64: 2, 32>}]} {
    %c0 = arith.constant 0 : index
    %c0_0 = arith.constant 0 : index
    %0 = vector.load %arg1[%c0, %c0_0] : memref<2x32xf32, #tpu.memory_space<vmem>>, vector<2x32xf32>
    %1 = arith.negf %0 : vector<2x32xf32>
    %2 = math.exp %1 : vector<2x32xf32>
    %cst = arith.constant 1.000000e+00 : f32
    %3 = vector.broadcast %cst : f32 to vector<2x32xf32>
    %4 = arith.addf %3, %2 : vector<2x32xf32>
    %5 = arith.divf %3, %4 : vector<2x32xf32>
    %6 = arith.mulf %0, %5 : vector<2x32xf32>
    %c0_1 = arith.constant 0 : index
    %c0_2 = arith.constant 0 : index
    %7 = vector.load %arg2[%c0_1, %c0_2] : memref<32x32xf32, #tpu.memory_space<vmem>>, vector<32x32xf32>
    %cst_3 = arith.constant dense<0.000000e+00> : vector<2x32xf32>
    %8 = tpu.matmul %6, %7, %cst_3 {dimension_numbers = #tpu.dot_dimension_numbers<[1], [0], [0], [1], [0, 0, 1, 1], [], []>} : vector<2x32xf32>, vector<32x32xf32>, vector<2x32xf32> -> vector<2x32xf32>
    %c0_4 = arith.constant 0 : index
    %c0_5 = arith.constant 0 : index
    %9 = vector.load %arg3[%c0_4, %c0_5] : memref<32x32xf32, #tpu.memory_space<vmem>>, vector<32x32xf32>
    %cst_6 = arith.constant dense<0.000000e+00> : vector<2x32xf32>
    %10 = tpu.matmul %6, %9, %cst_6 {dimension_numbers = #tpu.dot_dimension_numbers<[1], [0], [0], [1], [0, 0, 1, 1], [], []>} : vector<2x32xf32>, vector<32x32xf32>, vector<2x32xf32> -> vector<2x32xf32>
    %c0_7 = arith.constant 0 : index
    %c0_8 = arith.constant 0 : index
    %11 = vector.load %arg4[%c0_7, %c0_8] : memref<1x32xf32, #tpu.memory_space<vmem>>, vector<1x32xf32>
    %12 = vector.broadcast %11 : vector<1x32xf32> to vector<2x32xf32>
    %13 = arith.addf %8, %12 : vector<2x32xf32>
    %cst_9 = arith.constant 1.000000e+00 : f32
    %14 = vector.broadcast %cst_9 : f32 to vector<2x32xf32>
    %15 = arith.addf %13, %14 : vector<2x32xf32>
    %c0_10 = arith.constant 0 : index
    %c0_11 = arith.constant 0 : index
    %16 = vector.load %arg6[%c0_10, %c0_11] : memref<2x32xf32, #tpu.memory_space<vmem>>, vector<2x32xf32>
    tpu.vector_store %arg6[%c0_10, %c0_11], %15 {strides = array<i32>} : memref<2x32xf32, #tpu.memory_space<vmem>>, vector<2x32xf32>,
    %c0_12 = arith.constant 0 : index
    %c0_13 = arith.constant 0 : index
    %17 = vector.load %arg5[%c0_12, %c0_13] : memref<1x32xf32, #tpu.memory_space<vmem>>, vector<1x32xf32>
    %18 = vector.broadcast %17 : vector<1x32xf32> to vector<2x32xf32>
    %19 = arith.addf %10, %18 : vector<2x32xf32>
    %c0_14 = arith.constant 0 : index
    %c0_15 = arith.constant 0 : index
    %20 = vector.load %arg7[%c0_14, %c0_15] : memref<2x32xf32, #tpu.memory_space<vmem>>, vector<2x32xf32>
    tpu.vector_store %arg7[%c0_14, %c0_15], %19 {strides = array<i32>} : memref<2x32xf32, #tpu.memory_space<vmem>>, vector<2x32xf32>,
    return
  }
  func.func @transform_0(%arg0: i32) -> (i32, i32) {
    %c0_i32 = arith.constant 0 : i32
    %c0_i32_0 = arith.constant 0 : i32
    %c0_i32_1 = arith.constant 0 : i32
    return %c0_i32, %c0_i32_0 : i32, i32
  }
  func.func @transform_1(%arg0: i32) -> (i32, i32) {
    %c0_i32 = arith.constant 0 : i32
    %c0_i32_0 = arith.constant 0 : i32
    return %c0_i32, %arg0 : i32, i32
  }
  func.func @transform_2(%arg0: i32) -> (i32, i32) {
    %c0_i32 = arith.constant 0 : i32
    %c0_i32_0 = arith.constant 0 : i32
    return %c0_i32, %arg0 : i32, i32
  }
  func.func @transform_3(%arg0: i32) -> (i32, i32) {
    %c0_i32 = arith.constant 0 : i32
    %c0_i32_0 = arith.constant 0 : i32
    return %c0_i32, %arg0 : i32, i32
  }
  func.func @transform_4(%arg0: i32) -> (i32, i32) {
    %c0_i32 = arith.constant 0 : i32
    %c0_i32_0 = arith.constant 0 : i32
    return %c0_i32, %arg0 : i32, i32
  }
  func.func @transform_5(%arg0: i32) -> (i32, i32) {
    %c0_i32 = arith.constant 0 : i32
    %c0_i32_0 = arith.constant 0 : i32
    return %c0_i32, %arg0 : i32, i32
  }
  func.func @transform_6(%arg0: i32) -> (i32, i32) {
    %c0_i32 = arith.constant 0 : i32
    %c0_i32_0 = arith.constant 0 : i32
    return %c0_i32, %arg0 : i32, i32
  }
}

</mosaic_0001>

<bundles_post_ra>
// kernel: tpu_custom_call.1
= control target key start
LH: loop header
LB: loop body
LE: loop exit
PB: predicated region body
PF: predicated region fallthrough
CT: control target
= control target key end

     0   :  { %12 = vsyncpa [#allocation3], 0  ;;  %s496_s0 = inlined_call_operand.hbm [shape: f32[2,32], index: 0, kind: input, shape index: {}]   ;;  %s497_s1 = inlined_call_operand.hbm [shape: f32[32,32], index: 1, kind: input, shape index: {}]   ;;  %s498_s2 = inlined_call_operand.hbm [shape: f32[32,32], index: 2, kind: input, shape index: {}]   ;;  %s499_s3 = inlined_call_operand.vmem [shape: f32[1,32], index: 3, kind: input, shape index: {}]   ;;  %s500_s4 = inlined_call_operand.vmem [shape: f32[1,32], index: 4, kind: input, shape index: {}]   ;;  %s501_s5 = inlined_call_operand.hbm [shape: f32[2,32], index: 5, kind: output, shape index: {0}]   ;;  %s502_s6 = inlined_call_operand.hbm [shape: f32[2,32], index: 6, kind: output, shape index: {1}]  }
   0x1   :  { %13 = vsyncpa [#allocation6], 0 }
   0x2   :  { %14 = vsyncpa [#allocation4], 0 }
   0x3   :  { %15 = vsyncpa [#allocation10], 0  ;;  %s429_s21 = smov [#allocation5]  }
   0x4   :  { %s31_s22 = sshll.u32 %s429_s21, 4  ;;  %s32_s22 = int_to_ptr.vmem [resolvable:$true] %s31_s22 }
   0x5   :  { %s329_s23 = scalar_lea.vmem %s32_s22, 512  ;;  %p334_p1 = scmp.lt.s32.totalorder %s32_s22, %s32_s22 }
   0x6   :  { %p330_p0 = scmp.ne.s32.totalorder %s32_s22, %s329_s23  ;;  %p335_p2 = scmp.lt.s32.totalorder %s329_s23, %s329_s23 }
   0x8   :  { %p336_p3 = por %p335_p2, %p334_p1 }
   0xa   :  { %p337_p4 = pnand %p336_p3, %p330_p0 }
   0xc   :  { %340 = shalt.err (!%p337_p4)
}
   0xd   :  { %s430_s24 = smov 128   ;;  %s431_s25 = smov 8  }
   0xe   :  { %37 = dma.hbm_to_vmem [thread:$0]  %s497_s1, 512, %s32_s22, [#allocation6], %s430_s24, %s430_s24, %s431_s25  }
   0xf   :  { %s432_s28 = smov [#allocation2]   ;;  %s433_s30 = smov [#allocation7]  }
  0x10   :  { %s22_s29 = sshll.u32 %s432_s28, 4  ;;  %s43_s7 = sshll.u32 %s433_s30, 4  ;;  %s23_s29 = int_to_ptr.vmem [resolvable:$true] %s22_s29  ;;  %s44_s7 = int_to_ptr.vmem [resolvable:$true] %s43_s7 }
  0x11   :  { %s349_s8 = scalar_lea.vmem %s23_s29, 32  ;;  %p354_p6 = scmp.lt.s32.totalorder %s23_s29, %s23_s29 }
  0x12   :  { %p350_p5 = scmp.ne.s32.totalorder %s23_s29, %s349_s8  ;;  %p355_p7 = scmp.lt.s32.totalorder %s349_s8, %s349_s8 }
  0x14   :  { %p356_p8 = por %p355_p7, %p354_p6 }
  0x16   :  { %p357_p9 = pnand %p356_p8, %p350_p5 }
  0x18   :  { %360 = shalt.err (!%p357_p9)
}
  0x19   :  { %25 = dma.hbm_to_vmem [thread:$0]  %s496_s0, 32, %s23_s29, [#allocation3]  }
  0x1a   :  { %s369_s11 = scalar_lea.vmem %s44_s7, 512  ;;  %p374_p11 = scmp.lt.s32.totalorder %s44_s7, %s44_s7 }
  0x1b   :  { %p370_p10 = scmp.ne.s32.totalorder %s44_s7, %s369_s11  ;;  %p375_p12 = scmp.lt.s32.totalorder %s369_s11, %s369_s11 }
  0x1d   :  { %p376_p13 = por %p375_p12, %p374_p11 }
  0x1f   :  { %p377_p0 = pnand %p376_p13, %p370_p10 }
  0x21   :  { %380 = shalt.err (!%p377_p0)
}
  0x22   :  { %49 = dma.hbm_to_vmem [thread:$0]  %s498_s2, 512, %s44_s7, [#allocation6], %s430_s24, %s430_s24, %s431_s25  }
  0x23   :  { %421 = dma.done.wait [#allocation3], 32  }
  0x24   :  { %422 = vsyncadd [#allocation3], 4294967264 }
  0x25   :  { %423 = dma.done.wait [#allocation6], 1024  }
  0x26   :  { %424 = vsyncadd [#allocation6], 4294966272  ;;  %v434_v0 = vmov 0.0   ;;  %vm435_vm0 = vmmov 0   ;;  %v74_v1 = vld [vmem:[#allocation5 + $0x18] sm:$0xff]  ;;  %v73_v3 = vld [vmem:[#allocation5 + $0x10] sm:$0xff] }
  0x27   :  { %286 = vmatprep.subr.mxu0 %v434_v0  ;;  %297 = vmatprep.subr.mxu1 %v434_v0  ;;  %v78_v2 = vld [vmem:[#allocation7 + $0x18] sm:$0xff]  ;;  %v77_v4 = vld [vmem:[#allocation7 + $0x10] sm:$0xff]  ;;  %v72_v5 = vld [vmem:[#allocation5 + $0x8] sm:$0xff]  ;;  %vm86_vm1 = vcmask 261120   ;;  %s436_s15 = smov [#allocation9]   ;;  %vm161_vm2 = vcmask 254976  }
  0x28   :  { %294 = vmatprep.mubr.msk.f32.mxu0 %vm435_vm0, %v434_v0  ;;  %305 = vmatprep.mubr.msk.f32.mxu1 %vm435_vm0, %v434_v0  ;;  %v76_v6 = vld [vmem:[#allocation7 + $0x8] sm:$0xff]  ;;  %v63_v7 = vld [vmem:[#allocation2] sm:$0x3]  ;;  %v71_v9 = vld [vmem:[#allocation5] sm:$0xff]  ;;  %s257_s16 = sshll.u32 %s436_s15, 4  ;;  %s437_s17 = smov [#allocation8]   ;;  %s258_s16 = int_to_ptr.vmem [resolvable:$true] %s257_s16 }
  0x29   :  { %287 = vmatpush3.msra.mxu0 %v74_v1  ;;  %298 = vmatpush3.msra.mxu1 %v78_v2  ;;  %v271_v8 = vmul.f32 -1.442695, %v63_v7  ;;  %v75_v10 = vld [vmem:[#allocation7] sm:$0xff]  ;;  %v272_v15 = vld [vmem:[%s499_s3] ss:$0 sm:$0xff]  ;;  %s247_s18 = sshll.u32 %s437_s17, 4  ;;  %p386_p2 = scmp.lt.s32.totalorder %s258_s16, %s258_s16  ;;  %s248_s18 = int_to_ptr.vmem [resolvable:$true] %s247_s18 }
  0x2a   :  { %288 = vmatprep.subr.mxu0 %v434_v0  ;;  %299 = vmatprep.subr.mxu1 %v434_v0  ;;  %v274_v16 = vld [vmem:[%s500_s4] ss:$0 sm:$0xff]  ;;  %s381_s3 = scalar_lea.vmem %s258_s16, 32 }
  0x2b   :  { %289 = vmatpush3.msra.mxu0 %v73_v3  ;;  %300 = vmatpush3.msra.mxu1 %v77_v4  ;;  %317 = vpow2.f32 %v271_v8  ;;  %p382_p1 = scmp.ne.s32.totalorder %s258_s16, %s381_s3  ;;  %p387_p3 = scmp.lt.s32.totalorder %s381_s3, %s381_s3 }
  0x2c   :  { %290 = vmatprep.subr.mxu0 %v434_v0  ;;  %301 = vmatprep.subr.mxu1 %v434_v0 }
  0x2d   :  { %291 = vmatpush3.msra.mxu0 %v72_v5  ;;  %302 = vmatpush3.msra.mxu1 %v76_v6  ;;  %p388_p4 = por %p387_p3, %p386_p2 }
  0x2e   :  { %292 = vmatprep.subr.mxu0 %v434_v0  ;;  %303 = vmatprep.subr.mxu1 %v434_v0 }
  0x2f   :  { %293 = vmatpush3.msra.mxu0 %v71_v9  ;;  %304 = vmatpush3.msra.mxu1 %v75_v10  ;;  %p389_p5 = pnand %p388_p4, %p382_p1 }
  0x38   :  { %v318_v11 = vpop.eup %317 }
  0x39   :  { %v67_v12 = vadd.f32 1.0, %v318_v11 }
  0x3b   :  { %319 = vrcp.f32 %v67_v12 }
  0x48   :  { %v320_v13 = vpop.eup %319 }
  0x49   :  { %v70_v14 = vmul.f32 %v320_v13, %v63_v7 }
  0x4b   :  { %295 = vmatmul.mubr.msk.f32.vlgmr.msra.gmra.mxu0 %vm86_vm1, %v70_v14  ;;  %306 = vmatmul.mubr.msk.f32.vlgmr.msra.gmra.mxu1 %vm86_vm1, %v70_v14 }
 0x10b   :  { %v156_v17 = vpop.f32.mrf.mxu0  ;;  %v236_v18 = vpop.f32.mrf.mxu1 }
 0x10c   :  { %v157_v19 = vadd.f32 %v272_v15, %v156_v17  ;;  %v237_v20 = vadd.f32 %v274_v16, %v236_v18 }
 0x10d   :  { %v296_v21 = vpop.f32.mrf.mxu0  ;;  %v307_v22 = vpop.f32.mrf.mxu1 }
 0x10e   :  { %v160_v23 = vadd.f32 1.0, %v157_v19  ;;  %240 = vst.msk [vmem:[#allocation9] sm:$0x3] %vm161_vm2, %v237_v20 }
 0x10f   :  { %392 = shalt.err (!%p389_p5)
}
 0x110   :  { %260 = dma.vmem_to_hbm [thread:$0]  %s258_s16, 32, %s502_s6, [#allocation10]   ;;  %162 = vst.msk [vmem:[#allocation8] sm:$0x3] %vm161_vm2, %v160_v23 }
 0x111   :  { %s401_s20 = scalar_lea.vmem %s248_s18, 32  ;;  %p406_p7 = scmp.lt.s32.totalorder %s248_s18, %s248_s18 }
 0x112   :  { %p402_p6 = scmp.ne.s32.totalorder %s248_s18, %s401_s20  ;;  %p407_p8 = scmp.lt.s32.totalorder %s401_s20, %s401_s20 }
 0x114   :  { %p408_p9 = por %p407_p8, %p406_p7 }
 0x116   :  { %p409_p10 = pnand %p408_p9, %p402_p6 }
 0x118   :  { %412 = shalt.err (!%p409_p10)
}
 0x119   :  { %250 = dma.vmem_to_hbm [thread:$0]  %s248_s18, 32, %s501_s5, [#allocation4]  }
 0x11a   :  { %425 = dma.done.wait [#allocation4], 32  }
 0x11b   :  { %426 = vsyncadd [#allocation4], 4294967264 }
 0x11c   :  { %427 = dma.done.wait [#allocation10], 32  }
 0x11d   :  { %428 = vsyncadd [#allocation10], 4294967264 }
 0x11e   :  { %267 = vsyncpa [#allocation3], 1 }
 0x11f   :  { %268 = vsyncpa [#allocation6], 1 }
 0x120   :  { %269 = vsyncpa [#allocation4], 1 }
 0x121   :  { %270 = vsyncpa [#allocation10], 1 }

</bundles_post_ra>
